<compile_context>
chip_gen: v7x
topology: tpu7x:2x2x1
jax: 0.10.0
libtpu: 0.0.40
codegen_flags: <defaults>
</compile_context>

<pallas_src>
import functools

import jax
import jax.numpy as jnp
from jax.experimental import pallas as pl
from jax.experimental.pallas import tpu as pltpu

_SUB = 8


def _round_up(x, m):
    return ((x + m - 1) // m) * m


def _choose_tile_rows(H, W, target_elems):
    """Rows per spatial tile: multiple of 8 (sublanes), ~target_elems per block."""
    if H <= _SUB:
        return H  # tiny H -> single full-H tile, never ragged
    th = max(_SUB, (target_elems // max(W, 1)) // _SUB * _SUB)
    return min(th, _round_up(H, _SUB))


def _depth_stats_kernel(w_ref, img1_ref, img2_ref,
                        d1_ref, d2_ref, mn1_ref, mx1_ref, mn2_ref, mx2_ref,
                        *, C, tile_rows, H, ragged):
    """Pass 1: preprocess + proxy depth + fused per-tile min/max partials."""
    t = pl.program_id(1)
    bias = w_ref[C]  # 127.5 * sum(w): preprocessing bias folded to one add

    def proxy_depth(img_ref):
        # TODO(synk): the pretrained HF Depth-Anything-V2 backbone has no
        # Pallas equivalent; a deterministic 1x1-conv (channel-weighted sum)
        # over the preprocessed ([-1,1] -> [0,255], clamped) image stands in.
        acc = None
        for c in range(C):  # static unroll, per-channel ref reads
            xc = img_ref[0, c].astype(jnp.float32)  # native-dtype DMA, VPU cast
            # clip((x+1)*127.5, 0, 255) == 127.5*clip(x,-1,1) + 127.5; the
            # scale is folded into w_ref (wrapper), the bias added once below.
            term = w_ref[c] * jnp.clip(xc, -1.0, 1.0)
            acc = term if acc is None else acc + term
        return acc + bias

    d1 = proxy_depth(img1_ref)  # (TH, W)
    d2 = proxy_depth(img2_ref)
    d1_ref[0] = d1
    d2_ref[0] = d2

    # fused per-tile min/max partials (sublane reduce -> (1, W)); these tiny
    # outputs replace a standalone XLA re-read of both raw depth maps.
    mn1_ref[0, 0] = jnp.min(d1, axis=0, keepdims=True)
    mx1_ref[0, 0] = jnp.max(d1, axis=0, keepdims=True)
    mn2_ref[0, 0] = jnp.min(d2, axis=0, keepdims=True)
    mx2_ref[0, 0] = jnp.max(d2, axis=0, keepdims=True)

    if ragged:
        # only the last H tile reaches past H: redo its partials masked so all
        # other tiles stay mask-free (OOB output rows are dropped by Pallas).
        @pl.when(t == pl.num_programs(1) - 1)
        def _mask_tail():
            row = jax.lax.broadcasted_iota(jnp.int32, d1.shape, 0)
            valid = (t * tile_rows + row) < H
            inf = jnp.float32(jnp.inf)
            mn1_ref[0, 0] = jnp.min(jnp.where(valid, d1, inf), axis=0, keepdims=True)
            mx1_ref[0, 0] = jnp.max(jnp.where(valid, d1, -inf), axis=0, keepdims=True)
            mn2_ref[0, 0] = jnp.min(jnp.where(valid, d2, inf), axis=0, keepdims=True)
            mx2_ref[0, 0] = jnp.max(jnp.where(valid, d2, -inf), axis=0, keepdims=True)


def _normalize_l1_kernel(stats_ref, d1_ref, d2_ref, o1_ref, o2_ref, lp_ref,
                         *, tile_rows, H, ragged):
    """Pass 2: per-image affine normalization + per-tile L1 partial sums."""
    b = pl.program_id(0)
    t = pl.program_id(1)

    a1 = stats_ref[b, 0]
    c1 = stats_ref[b, 1]
    a2 = stats_ref[b, 2]
    c2 = stats_ref[b, 3]

    n1 = d1_ref[0] * a1 + c1  # (TH, W)
    n2 = d2_ref[0] * a2 + c2
    o1_ref[0] = n1
    o2_ref[0] = n2

    absdiff = jnp.abs(n1 - n2)
    lp_ref[0, 0] = jnp.sum(absdiff, axis=0, keepdims=True)

    if ragged:
        @pl.when(t == pl.num_programs(1) - 1)
        def _mask_tail():
            row = jax.lax.broadcasted_iota(jnp.int32, absdiff.shape, 0)
            valid = (t * tile_rows + row) < H
            lp_ref[0, 0] = jnp.sum(jnp.where(valid, absdiff, 0.0),
                                   axis=0, keepdims=True)


def depth_consistency_loss(img1, img2, w, *,
                           pass1_tile_elems=128 * 1024,
                           pass2_tile_elems=512 * 1024):
    """Returns (loss_scalar, depth1_norm (B,1,H,W), depth2_norm (B,1,H,W))."""
    B, C, H, W = img1.shape
    assert img2.shape == img1.shape
    N = H * W

    # decoupled tile sizes: pass 2 carries no C factor, so it gets bigger tiles
    th1 = _choose_tile_rows(H, W, pass1_tile_elems)
    nt1 = -(-H // th1)
    ragged1 = (nt1 * th1) != H

    th2 = _choose_tile_rows(H, W, pass2_tile_elems)
    nt2 = -(-H // th2)
    ragged2 = (nt2 * th2) != H

    w = w.astype(jnp.float32)
    # preprocessing affine folded into the channel weights (+ single bias add)
    wvec = jnp.concatenate([127.5 * w, 127.5 * jnp.sum(w)[None]])  # (C+1,)

    depth_shape = jax.ShapeDtypeStruct((B, H, W), jnp.float32)
    stat_shape = jax.ShapeDtypeStruct((B, nt1, 1, W), jnp.float32)
    lp_shape = jax.ShapeDtypeStruct((B, nt2, 1, W), jnp.float32)

    img_bytes = int(img1.dtype.itemsize)
    ce1 = pl.CostEstimate(flops=8 * B * C * N, transcendentals=0,
                          bytes_accessed=2 * B * C * N * img_bytes + 2 * B * N * 4)
    ce2 = pl.CostEstimate(flops=6 * B * N, transcendentals=0,
                          bytes_accessed=4 * B * N * 4)

    cparams = pltpu.CompilerParams(
        dimension_semantics=("parallel", "parallel"),
        vmem_limit_bytes=32 * 1024 * 1024)

    # ---- pass 1: preprocess + proxy depth + fused per-tile min/max ----
    d1_raw, d2_raw, mn1, mx1, mn2, mx2 = pl.pallas_call(
        functools.partial(_depth_stats_kernel, C=C, tile_rows=th1, H=H,
                          ragged=ragged1),
        out_shape=(depth_shape, depth_shape,
                   stat_shape, stat_shape, stat_shape, stat_shape),
        grid_spec=pltpu.PrefetchScalarGridSpec(
            num_scalar_prefetch=0,
            grid=(B, nt1),
            in_specs=[
                pl.BlockSpec(memory_space=pltpu.MemorySpace.SMEM),      # wvec
                pl.BlockSpec((1, C, th1, W), lambda b, t: (b, 0, t, 0)),
                pl.BlockSpec((1, C, th1, W), lambda b, t: (b, 0, t, 0)),
            ],
            out_specs=[
                pl.BlockSpec((1, th1, W), lambda b, t: (b, t, 0)),
                pl.BlockSpec((1, th1, W), lambda b, t: (b, t, 0)),
                pl.BlockSpec((1, 1, 1, W), lambda b, t: (b, t, 0, 0)),
                pl.BlockSpec((1, 1, 1, W), lambda b, t: (b, t, 0, 0)),
                pl.BlockSpec((1, 1, 1, W), lambda b, t: (b, t, 0, 0)),
                pl.BlockSpec((1, 1, 1, W), lambda b, t: (b, t, 0, 0)),
            ],
        ),
        compiler_params=cparams,
        cost_estimate=ce1,
    )(wvec, img1, img2)

    # ---- per-image affine constants from the tiny partials (XLA) ----
    def affine_consts(mn, mx):
        d_min = mn.min(axis=(1, 2, 3))
        d_max = mx.max(axis=(1, 2, 3))
        ok = d_max > d_min
        denom = jnp.where(ok, d_max - d_min, 1.0)
        scale = jnp.where(ok, 1.0 / denom, 1.0)   # reciprocal precomputed once
        bias = jnp.where(ok, -d_min * scale, 0.0)  # degenerate case -> identity
        return scale, bias

    a1, c1 = affine_consts(mn1, mx1)
    a2, c2 = affine_consts(mn2, mx2)
    stats = jnp.stack([a1, c1, a2, c2], axis=1)  # (B, 4) f32 -> SMEM

    # ---- pass 2: normalize + per-tile L1 partial sums (megacore friendly) ----
    d1n, d2n, lp = pl.pallas_call(
        functools.partial(_normalize_l1_kernel, tile_rows=th2, H=H,
                          ragged=ragged2),
        out_shape=(depth_shape, depth_shape, lp_shape),
        grid_spec=pltpu.PrefetchScalarGridSpec(
            num_scalar_prefetch=0,
            grid=(B, nt2),
            in_specs=[
                pl.BlockSpec(memory_space=pltpu.MemorySpace.SMEM),      # stats
                pl.BlockSpec((1, th2, W), lambda b, t: (b, t, 0)),
                pl.BlockSpec((1, th2, W), lambda b, t: (b, t, 0)),
            ],
            out_specs=[
                pl.BlockSpec((1, th2, W), lambda b, t: (b, t, 0)),
                pl.BlockSpec((1, th2, W), lambda b, t: (b, t, 0)),
                pl.BlockSpec((1, 1, 1, W), lambda b, t: (b, t, 0, 0)),
            ],
        ),
        compiler_params=cparams,
        cost_estimate=ce2,
    )(stats, d1_raw, d2_raw)

    loss = lp.sum() / jnp.float32(B * N)
    # reshape (B,H,W) -> (B,1,H,W) keeps the last two dims: free metadata reshape
    return loss, d1n.reshape(B, 1, H, W), d2n.reshape(B, 1, H, W)


def _reference(img1, img2, w):
    """Pure-JAX reference of the same semantics (for validation)."""
    def depth(img):
        x = jnp.clip((img + 1.0) * 0.5 * 255.0, 0.0, 255.0)
        return jnp.einsum('bchw,c->bhw', x, w)[:, None]  # (B,1,H,W)

    def norm(d):
        d_min = d.min(axis=(1, 2, 3), keepdims=True)
        d_max = d.max(axis=(1, 2, 3), keepdims=True)
        denom = jnp.where(d_max > d_min, d_max - d_min, 1.0)
        return jnp.where(d_max > d_min, (d - d_min) / denom, d)

    d1n, d2n = norm(depth(img1)), norm(depth(img2))
    return jnp.mean(jnp.abs(d1n - d2n)), d1n, d2n


if __name__ == "__main__":
    key = jax.random.PRNGKey(0)
    # deterministic proxy "depth model" weights (luminance coefficients)
    w = jnp.array([0.299, 0.587, 0.114], dtype=jnp.float32)

    # (shape, pass1_tile_elems, pass2_tile_elems); the second case forces
    # multiple, differently-sized spatial tiles plus a ragged last tile.
    cases = (
        ((2, 3, 16, 16), 128 * 1024, 512 * 1024),
        ((2, 3, 45, 48), 8 * 48, 16 * 48),
    )
    for (B, C, H, W), te1, te2 in cases:
        k1, k2 = jax.random.split(jax.random.fold_in(key, H))
        img1 = jax.random.uniform(k1, (B, C, H, W), jnp.float32, -1.0, 1.0)
        img2 = jax.random.uniform(k2, (B, C, H, W), jnp.float32, -1.0, 1.0)

        loss, d1n, d2n = depth_consistency_loss(
            img1, img2, w, pass1_tile_elems=te1, pass2_tile_elems=te2)
        jax.block_until_ready((loss, d1n, d2n))

        ref_loss, ref_d1, ref_d2 = _reference(img1, img2, w)
        assert jnp.allclose(loss, ref_loss, atol=1e-5), (loss, ref_loss)
        assert jnp.allclose(d1n, ref_d1, atol=1e-5)
        assert jnp.allclose(d2n, ref_d2, atol=1e-5)

    print("KERNEL_OK")
</pallas_src>

<mosaic_0001>
module attributes {stable_mosaic.version = 11 : i64} {
  func.func @_depth_stats_kernel(%arg0: i32, %arg1: i32, %arg2: memref<4xf32, #tpu.memory_space<smem>>, %arg3: memref<1x3x16x16xf32, #tpu.memory_space<vmem>>, %arg4: memref<1x3x16x16xf32, #tpu.memory_space<vmem>>, %arg5: memref<1x16x16xf32, #tpu.memory_space<vmem>>, %arg6: memref<1x16x16xf32, #tpu.memory_space<vmem>>, %arg7: memref<1x1x1x16xf32, #tpu.memory_space<vmem>>, %arg8: memref<1x1x1x16xf32, #tpu.memory_space<vmem>>, %arg9: memref<1x1x1x16xf32, #tpu.memory_space<vmem>>, %arg10: memref<1x1x1x16xf32, #tpu.memory_space<vmem>>) attributes {dimension_semantics = [#tpu.dimension_semantics<parallel>, #tpu.dimension_semantics<parallel>], iteration_bounds = array<i64: 2, 1>, scalar_prefetch = 0 : i64, scratch_operands = 0 : i64, tpu.core_type = #tpu.core_type<tc>, window_params = [{transform_indices = @transform_0, window_bounds = array<i64: 4>}, {transform_indices = @transform_1, window_bounds = array<i64: 1, 3, 16, 16>}, {transform_indices = @transform_2, window_bounds = array<i64: 1, 3, 16, 16>}, {transform_indices = @transform_3, window_bounds = array<i64: 1, 16, 16>}, {transform_indices = @transform_4, window_bounds = array<i64: 1, 16, 16>}, {transform_indices = @transform_5, window_bounds = array<i64: 1, 1, 1, 16>}, {transform_indices = @transform_6, window_bounds = array<i64: 1, 1, 1, 16>}, {transform_indices = @transform_7, window_bounds = array<i64: 1, 1, 1, 16>}, {transform_indices = @transform_8, window_bounds = array<i64: 1, 1, 1, 16>}]} {
    %c3 = arith.constant 3 : index
    %0 = memref.load %arg2[%c3] : memref<4xf32, #tpu.memory_space<smem>>
    %c0 = arith.constant 0 : index
    %c0_0 = arith.constant 0 : index
    %c0_1 = arith.constant 0 : index
    %c0_2 = arith.constant 0 : index
    %1 = vector.load %arg3[%c0, %c0_0, %c0_1, %c0_2] : memref<1x3x16x16xf32, #tpu.memory_space<vmem>>, vector<1x1x16x16xf32>
    %2 = vector.shape_cast %1 : vector<1x1x16x16xf32> to vector<16x16xf32>
    %c0_3 = arith.constant 0 : index
    %3 = memref.load %arg2[%c0_3] : memref<4xf32, #tpu.memory_space<smem>>
    %cst = arith.constant -1.000000e+00 : f32
    %cst_4 = arith.constant 1.000000e+00 : f32
    %4 = vector.broadcast %cst : f32 to vector<16x16xf32>
    %5 = arith.maximumf %4, %2 : vector<16x16xf32>
    %6 = vector.broadcast %cst_4 : f32 to vector<16x16xf32>
    %7 = arith.minimumf %6, %5 : vector<16x16xf32>
    %8 = vector.broadcast %3 : f32 to vector<16x16xf32>
    %9 = arith.mulf %8, %7 : vector<16x16xf32>
    %c0_5 = arith.constant 0 : index
    %c1 = arith.constant 1 : index
    %c0_6 = arith.constant 0 : index
    %c0_7 = arith.constant 0 : index
    %10 = vector.load %arg3[%c0_5, %c1, %c0_6, %c0_7] : memref<1x3x16x16xf32, #tpu.memory_space<vmem>>, vector<1x1x16x16xf32>
    %11 = vector.shape_cast %10 : vector<1x1x16x16xf32> to vector<16x16xf32>
    %c1_8 = arith.constant 1 : index
    %12 = memref.load %arg2[%c1_8] : memref<4xf32, #tpu.memory_space<smem>>
    %cst_9 = arith.constant -1.000000e+00 : f32
    %cst_10 = arith.constant 1.000000e+00 : f32
    %13 = vector.broadcast %cst_9 : f32 to vector<16x16xf32>
    %14 = arith.maximumf %13, %11 : vector<16x16xf32>
    %15 = vector.broadcast %cst_10 : f32 to vector<16x16xf32>
    %16 = arith.minimumf %15, %14 : vector<16x16xf32>
    %17 = vector.broadcast %12 : f32 to vector<16x16xf32>
    %18 = arith.mulf %17, %16 : vector<16x16xf32>
    %19 = arith.addf %9, %18 : vector<16x16xf32>
    %c0_11 = arith.constant 0 : index
    %c2 = arith.constant 2 : index
    %c0_12 = arith.constant 0 : index
    %c0_13 = arith.constant 0 : index
    %20 = vector.load %arg3[%c0_11, %c2, %c0_12, %c0_13] : memref<1x3x16x16xf32, #tpu.memory_space<vmem>>, vector<1x1x16x16xf32>
    %21 = vector.shape_cast %20 : vector<1x1x16x16xf32> to vector<16x16xf32>
    %c2_14 = arith.constant 2 : index
    %22 = memref.load %arg2[%c2_14] : memref<4xf32, #tpu.memory_space<smem>>
    %cst_15 = arith.constant -1.000000e+00 : f32
    %cst_16 = arith.constant 1.000000e+00 : f32
    %23 = vector.broadcast %cst_15 : f32 to vector<16x16xf32>
    %24 = arith.maximumf %23, %21 : vector<16x16xf32>
    %25 = vector.broadcast %cst_16 : f32 to vector<16x16xf32>
    %26 = arith.minimumf %25, %24 : vector<16x16xf32>
    %27 = vector.broadcast %22 : f32 to vector<16x16xf32>
    %28 = arith.mulf %27, %26 : vector<16x16xf32>
    %29 = arith.addf %19, %28 : vector<16x16xf32>
    %30 = vector.broadcast %0 : f32 to vector<16x16xf32>
    %31 = arith.addf %29, %30 : vector<16x16xf32>
    %c0_17 = arith.constant 0 : index
    %c0_18 = arith.constant 0 : index
    %c0_19 = arith.constant 0 : index
    %c0_20 = arith.constant 0 : index
    %32 = vector.load %arg4[%c0_17, %c0_18, %c0_19, %c0_20] : memref<1x3x16x16xf32, #tpu.memory_space<vmem>>, vector<1x1x16x16xf32>
    %33 = vector.shape_cast %32 : vector<1x1x16x16xf32> to vector<16x16xf32>
    %c0_21 = arith.constant 0 : index
    %34 = memref.load %arg2[%c0_21] : memref<4xf32, #tpu.memory_space<smem>>
    %cst_22 = arith.constant -1.000000e+00 : f32
    %cst_23 = arith.constant 1.000000e+00 : f32
    %35 = vector.broadcast %cst_22 : f32 to vector<16x16xf32>
    %36 = arith.maximumf %35, %33 : vector<16x16xf32>
    %37 = vector.broadcast %cst_23 : f32 to vector<16x16xf32>
    %38 = arith.minimumf %37, %36 : vector<16x16xf32>
    %39 = vector.broadcast %34 : f32 to vector<16x16xf32>
    %40 = arith.mulf %39, %38 : vector<16x16xf32>
    %c0_24 = arith.constant 0 : index
    %c1_25 = arith.constant 1 : index
    %c0_26 = arith.constant 0 : index
    %c0_27 = arith.constant 0 : index
    %41 = vector.load %arg4[%c0_24, %c1_25, %c0_26, %c0_27] : memref<1x3x16x16xf32, #tpu.memory_space<vmem>>, vector<1x1x16x16xf32>
    %42 = vector.shape_cast %41 : vector<1x1x16x16xf32> to vector<16x16xf32>
    %c1_28 = arith.constant 1 : index
    %43 = memref.load %arg2[%c1_28] : memref<4xf32, #tpu.memory_space<smem>>
    %cst_29 = arith.constant -1.000000e+00 : f32
    %cst_30 = arith.constant 1.000000e+00 : f32
    %44 = vector.broadcast %cst_29 : f32 to vector<16x16xf32>
    %45 = arith.maximumf %44, %42 : vector<16x16xf32>
    %46 = vector.broadcast %cst_30 : f32 to vector<16x16xf32>
    %47 = arith.minimumf %46, %45 : vector<16x16xf32>
    %48 = vector.broadcast %43 : f32 to vector<16x16xf32>
    %49 = arith.mulf %48, %47 : vector<16x16xf32>
    %50 = arith.addf %40, %49 : vector<16x16xf32>
    %c0_31 = arith.constant 0 : index
    %c2_32 = arith.constant 2 : index
    %c0_33 = arith.constant 0 : index
    %c0_34 = arith.constant 0 : index
    %51 = vector.load %arg4[%c0_31, %c2_32, %c0_33, %c0_34] : memref<1x3x16x16xf32, #tpu.memory_space<vmem>>, vector<1x1x16x16xf32>
    %52 = vector.shape_cast %51 : vector<1x1x16x16xf32> to vector<16x16xf32>
    %c2_35 = arith.constant 2 : index
    %53 = memref.load %arg2[%c2_35] : memref<4xf32, #tpu.memory_space<smem>>
    %cst_36 = arith.constant -1.000000e+00 : f32
    %cst_37 = arith.constant 1.000000e+00 : f32
    %54 = vector.broadcast %cst_36 : f32 to vector<16x16xf32>
    %55 = arith.maximumf %54, %52 : vector<16x16xf32>
    %56 = vector.broadcast %cst_37 : f32 to vector<16x16xf32>
    %57 = arith.minimumf %56, %55 : vector<16x16xf32>
    %58 = vector.broadcast %53 : f32 to vector<16x16xf32>
    %59 = arith.mulf %58, %57 : vector<16x16xf32>
    %60 = arith.addf %50, %59 : vector<16x16xf32>
    %61 = vector.broadcast %0 : f32 to vector<16x16xf32>
    %62 = arith.addf %60, %61 : vector<16x16xf32>
    %c0_38 = arith.constant 0 : index
    %c0_39 = arith.constant 0 : index
    %c0_40 = arith.constant 0 : index
    %63 = vector.load %arg5[%c0_38, %c0_39, %c0_40] : memref<1x16x16xf32, #tpu.memory_space<vmem>>, vector<1x16x16xf32>
    %64 = vector.shape_cast %63 : vector<1x16x16xf32> to vector<16x16xf32>
    %65 = vector.shape_cast %31 : vector<16x16xf32> to vector<1x16x16xf32>
    tpu.vector_store %arg5[%c0_38, %c0_39, %c0_40], %65 {strides = array<i32>} : memref<1x16x16xf32, #tpu.memory_space<vmem>>, vector<1x16x16xf32>,
    %c0_41 = arith.constant 0 : index
    %c0_42 = arith.constant 0 : index
    %c0_43 = arith.constant 0 : index
    %66 = vector.load %arg6[%c0_41, %c0_42, %c0_43] : memref<1x16x16xf32, #tpu.memory_space<vmem>>, vector<1x16x16xf32>
    %67 = vector.shape_cast %66 : vector<1x16x16xf32> to vector<16x16xf32>
    %68 = vector.shape_cast %62 : vector<16x16xf32> to vector<1x16x16xf32>
    tpu.vector_store %arg6[%c0_41, %c0_42, %c0_43], %68 {strides = array<i32>} : memref<1x16x16xf32, #tpu.memory_space<vmem>>, vector<1x16x16xf32>,
    %cst_44 = arith.constant dense<0x7F800000> : vector<16xf32>
    %69 = vector.multi_reduction <minimumf>, %31, %cst_44 [0] : vector<16x16xf32> to vector<16xf32>
    %70 = vector.shape_cast %69 : vector<16xf32> to vector<1x16xf32>
    %c0_45 = arith.constant 0 : index
    %c0_46 = arith.constant 0 : index
    %c0_47 = arith.constant 0 : index
    %c0_48 = arith.constant 0 : index
    %71 = vector.load %arg7[%c0_45, %c0_46, %c0_47, %c0_48] : memref<1x1x1x16xf32, #tpu.memory_space<vmem>>, vector<1x1x1x16xf32>
    %72 = vector.shape_cast %71 : vector<1x1x1x16xf32> to vector<1x16xf32>
    %73 = vector.shape_cast %70 : vector<1x16xf32> to vector<1x1x1x16xf32>
    tpu.vector_store %arg7[%c0_45, %c0_46, %c0_47, %c0_48], %73 {strides = array<i32>} : memref<1x1x1x16xf32, #tpu.memory_space<vmem>>, vector<1x1x1x16xf32>,
    %cst_49 = arith.constant dense<0xFF800000> : vector<16xf32>
    %74 = vector.multi_reduction <maximumf>, %31, %cst_49 [0] : vector<16x16xf32> to vector<16xf32>
    %75 = vector.shape_cast %74 : vector<16xf32> to vector<1x16xf32>
    %c0_50 = arith.constant 0 : index
    %c0_51 = arith.constant 0 : index
    %c0_52 = arith.constant 0 : index
    %c0_53 = arith.constant 0 : index
    %76 = vector.load %arg8[%c0_50, %c0_51, %c0_52, %c0_53] : memref<1x1x1x16xf32, #tpu.memory_space<vmem>>, vector<1x1x1x16xf32>
    %77 = vector.shape_cast %76 : vector<1x1x1x16xf32> to vector<1x16xf32>
    %78 = vector.shape_cast %75 : vector<1x16xf32> to vector<1x1x1x16xf32>
    tpu.vector_store %arg8[%c0_50, %c0_51, %c0_52, %c0_53], %78 {strides = array<i32>} : memref<1x1x1x16xf32, #tpu.memory_space<vmem>>, vector<1x1x1x16xf32>,
    %cst_54 = arith.constant dense<0x7F800000> : vector<16xf32>
    %79 = vector.multi_reduction <minimumf>, %62, %cst_54 [0] : vector<16x16xf32> to vector<16xf32>
    %80 = vector.shape_cast %79 : vector<16xf32> to vector<1x16xf32>
    %c0_55 = arith.constant 0 : index
    %c0_56 = arith.constant 0 : index
    %c0_57 = arith.constant 0 : index
    %c0_58 = arith.constant 0 : index
    %81 = vector.load %arg9[%c0_55, %c0_56, %c0_57, %c0_58] : memref<1x1x1x16xf32, #tpu.memory_space<vmem>>, vector<1x1x1x16xf32>
    %82 = vector.shape_cast %81 : vector<1x1x1x16xf32> to vector<1x16xf32>
    %83 = vector.shape_cast %80 : vector<1x16xf32> to vector<1x1x1x16xf32>
    tpu.vector_store %arg9[%c0_55, %c0_56, %c0_57, %c0_58], %83 {strides = array<i32>} : memref<1x1x1x16xf32, #tpu.memory_space<vmem>>, vector<1x1x1x16xf32>,
    %cst_59 = arith.constant dense<0xFF800000> : vector<16xf32>
    %84 = vector.multi_reduction <maximumf>, %62, %cst_59 [0] : vector<16x16xf32> to vector<16xf32>
    %85 = vector.shape_cast %84 : vector<16xf32> to vector<1x16xf32>
    %c0_60 = arith.constant 0 : index
    %c0_61 = arith.constant 0 : index
    %c0_62 = arith.constant 0 : index
    %c0_63 = arith.constant 0 : index
    %86 = vector.load %arg10[%c0_60, %c0_61, %c0_62, %c0_63] : memref<1x1x1x16xf32, #tpu.memory_space<vmem>>, vector<1x1x1x16xf32>
    %87 = vector.shape_cast %86 : vector<1x1x1x16xf32> to vector<1x16xf32>
    %88 = vector.shape_cast %85 : vector<1x16xf32> to vector<1x1x1x16xf32>
    tpu.vector_store %arg10[%c0_60, %c0_61, %c0_62, %c0_63], %88 {strides = array<i32>} : memref<1x1x1x16xf32, #tpu.memory_space<vmem>>, vector<1x1x1x16xf32>,
    return
  }
  func.func @transform_0(%arg0: i32, %arg1: i32) -> i32 {
    %c0_i32 = arith.constant 0 : i32
    %c0_i32_0 = arith.constant 0 : i32
    return %c0_i32 : i32
  }
  func.func @transform_1(%arg0: i32, %arg1: i32) -> (i32, i32, i32, i32) {
    %c0_i32 = arith.constant 0 : i32
    %c0_i32_0 = arith.constant 0 : i32
    %c0_i32_1 = arith.constant 0 : i32
    return %arg0, %c0_i32, %arg1, %c0_i32_0 : i32, i32, i32, i32
  }
  func.func @transform_2(%arg0: i32, %arg1: i32) -> (i32, i32, i32, i32) {
    %c0_i32 = arith.constant 0 : i32
    %c0_i32_0 = arith.constant 0 : i32
    %c0_i32_1 = arith.constant 0 : i32
    return %arg0, %c0_i32, %arg1, %c0_i32_0 : i32, i32, i32, i32
  }
  func.func @transform_3(%arg0: i32, %arg1: i32) -> (i32, i32, i32) {
    %c0_i32 = arith.constant 0 : i32
    %c0_i32_0 = arith.constant 0 : i32
    return %arg0, %arg1, %c0_i32 : i32, i32, i32
  }
  func.func @transform_4(%arg0: i32, %arg1: i32) -> (i32, i32, i32) {
    %c0_i32 = arith.constant 0 : i32
    %c0_i32_0 = arith.constant 0 : i32
    return %arg0, %arg1, %c0_i32 : i32, i32, i32
  }
  func.func @transform_5(%arg0: i32, %arg1: i32) -> (i32, i32, i32, i32) {
    %c0_i32 = arith.constant 0 : i32
    %c0_i32_0 = arith.constant 0 : i32
    %c0_i32_1 = arith.constant 0 : i32
    return %arg0, %arg1, %c0_i32, %c0_i32_0 : i32, i32, i32, i32
  }
  func.func @transform_6(%arg0: i32, %arg1: i32) -> (i32, i32, i32, i32) {
    %c0_i32 = arith.constant 0 : i32
    %c0_i32_0 = arith.constant 0 : i32
    %c0_i32_1 = arith.constant 0 : i32
    return %arg0, %arg1, %c0_i32, %c0_i32_0 : i32, i32, i32, i32
  }
  func.func @transform_7(%arg0: i32, %arg1: i32) -> (i32, i32, i32, i32) {
    %c0_i32 = arith.constant 0 : i32
    %c0_i32_0 = arith.constant 0 : i32
    %c0_i32_1 = arith.constant 0 : i32
    return %arg0, %arg1, %c0_i32, %c0_i32_0 : i32, i32, i32, i32
  }
  func.func @transform_8(%arg0: i32, %arg1: i32) -> (i32, i32, i32, i32) {
    %c0_i32 = arith.constant 0 : i32
    %c0_i32_0 = arith.constant 0 : i32
    %c0_i32_1 = arith.constant 0 : i32
    return %arg0, %arg1, %c0_i32, %c0_i32_0 : i32, i32, i32, i32
  }
}

</mosaic_0001>

<bundles_post_ra>
// kernel: tpu_custom_call.1
= control target key start
LH: loop header
LB: loop body
LE: loop exit
PB: predicated region body
PF: predicated region fallthrough
CT: control target
= control target key end

     0   :  { %s1957_s0 = inlined_call_operand.hbm [shape: f32[4], index: 0, kind: input, shape index: {}]   ;;  %s1958_s1 = inlined_call_operand.hbm [shape: f32[2,3,16,16], index: 1, kind: input, shape index: {}]   ;;  %s1959_s2 = inlined_call_operand.hbm [shape: f32[2,3,16,16], index: 2, kind: input, shape index: {}]   ;;  %s1960_s3 = inlined_call_operand.hbm [shape: f32[2,16,16], index: 3, kind: output, shape index: {0}]   ;;  %s1961_s4 = inlined_call_operand.hbm [shape: f32[2,16,16], index: 4, kind: output, shape index: {1}]   ;;  %s1962_s5 = inlined_call_operand.hbm [shape: f32[2,1,1,16], index: 5, kind: output, shape index: {2}]   ;;  %s1963_s6 = inlined_call_operand.hbm [shape: f32[2,1,1,16], index: 6, kind: output, shape index: {3}]   ;;  %s1964_s7 = inlined_call_operand.hbm [shape: f32[2,1,1,16], index: 7, kind: output, shape index: {4}]   ;;  %s1965_s8 = inlined_call_operand.hbm [shape: f32[2,1,1,16], index: 8, kind: output, shape index: {5}]  }
   0x1   :  { %1977 = sst [smem:[#allocation30_spill]] %s1957_s0 }
   0x2   :  { %1978 = sst [smem:[#allocation31_spill]] %s1958_s1 }
   0x3   :  { %1979 = sst [smem:[#allocation32_spill]] %s1959_s2 }
   0x4   :  { %1980 = sst [smem:[#allocation33_spill]] %s1960_s3 }
   0x5   :  { %14 = vsyncpa [#allocation5], 0 }
   0x6   :  { %15 = vsyncpa [#allocation3], 0 }
   0x7   :  { %17 = vsyncpa [#allocation3 + $0x1], 0 }
   0x8   :  { %18 = vsyncpa [#allocation8], 0 }
   0x9   :  { %20 = vsyncpa [#allocation8 + $0x1], 0 }
   0xa   :  { %21 = vsyncpa [#allocation4], 0 }
   0xb   :  { %23 = vsyncpa [#allocation4 + $0x1], 0 }
   0xc   :  { %24 = vsyncpa [#allocation11], 0 }
   0xd   :  { %26 = vsyncpa [#allocation11 + $0x1], 0 }
   0xe   :  { %27 = vsyncpa [#allocation14], 0 }
   0xf   :  { %29 = vsyncpa [#allocation14 + $0x1], 0 }
  0x10   :  { %30 = vsyncpa [#allocation17], 0 }
  0x11   :  { %32 = vsyncpa [#allocation17 + $0x1], 0  ;;  %s1487_s27 = smov 0   ;;  %s1489_s28 = smov 0  }
  0x12   :  { %s1491_s29 = smov 0   ;;  %s1493_s30 = smov 0  }
  0x13   :  { %s1495_s9 = smov 0   ;;  %s1497_s10 = smov 0  }
  0x14 LB: > { %1981 = sst [smem:[#allocation25_spill]] %s1415_s29  ;;  %s1518_s11 = sadd.s32 4294967295, %s1427_s10   ;;  %s1427_s10 = sphi %s1497_s10, %s38_s10   ;;  %s1423_s9 = sphi %s1495_s9, %s2015_s9   ;;  %s1419_s30 = sphi %s1493_s30, %s2014_s30   ;;  %s1415_s29 = sphi %s1491_s29, %s2010_s29   ;;  %s1411_s28 = sphi %s1489_s28, %s2013_s28   ;;  %s1407_s27 = sphi %s1487_s27, %s2012_s27  }
  0x15   : > { %1982 = sst [smem:[#allocation26_spill]] %s1427_s10  ;;  %s1966_s12 = sadd.s32 4294967294, %s1427_s10  }
  0x16   : > { %p87_p0 = scmp.ne.s32.totalorder %s1415_s29, %s1411_s28  ;;  %p88_p1 = scmp.eq.s32.totalorder %s1427_s10, 0 }
  0x17   : > { %p93_p2 = scmp.ne.s32.totalorder %s1411_s28, %s1407_s27  ;;  %p1971_p3 = scmp.eq.s32.totalorder %s1518_s11, 0 }
  0x18   : > { %p147_p4 = scmp.eq.s32.totalorder %s1518_s11, 1  ;;  %p89_p5 = por %p88_p1, %p87_p0 }
  0x19   : > { %p153_p6 = scmp.eq.s32.totalorder %s1966_s12, 1  ;;  %p1533_p7 = por %p1971_p3, %p93_p2 }
  0x1a   : > { %p1537_p8 = por %p147_p4, %p87_p0  ;;  %p954_p10 = scmp.ge.s32.totalorder %s1427_s10, 1 }
  0x1b   : > { %s1983_s14 = scalar_select %p1533_p7, 1, 0 }
  0x1c   : > { %s1984_s15 = scalar_select %p1537_p8, 1, 0 }
  0x1d   : > { %p1541_p9 = por %p153_p6, %p93_p2  ;;  %p300_p11 = scmp.lt.s32.totalorder %s1427_s10, 3 }
  0x1e   : > { %p1056_p1 = scmp.lt.s32.totalorder %s1427_s10, 2  ;;  %s1554_s18 = sand.u32 1, %s1415_s29  }
  0x1f   : > { %s1985_s16 = scalar_select %p1541_p9, 1, 0 }
  0x20   : > { %p1548_p13 = pnand %p954_p10, %p300_p11  ;;  %p1558_p4 = pnand %p1056_p1, %p89_p5 }
  0x21   : > { %1986 = sst [smem:[#allocation27_spill]] %s1985_s16  ;;  %s50_s20 = sadd.s32 1, %s1423_s9 }
  0x22   : > { %p1025_p0 = pneg %p1548_p13  ;;  %p52_p6 = scmp.ge.s32.totalorder %s50_s20, 2 }
  0x23   : > { %s1989_s0 = sld [smem:[#allocation30_spill]] }
  0x24   : > { %p1026_p2 = pnand %p1025_p0, %p1971_p3 }
  0x26   : > { %p1114_p11 = pneg %p1026_p2 }
  0x29   : > { %s1112_s24 = scalar_lea.hbm %s1989_s0, 16 }
  0x2a   : > { %p1113_p10 = scmp.ne.s32.totalorder %s1989_s0, %s1112_s24  ;;  %p1119_p5 = scmp.lt.u32.totalorder %s1112_s24, %s1989_s0 }
  0x2c   : > { %p1115_p12 = pnand %p1114_p11, %p1113_p10 }
  0x2e   : > { %p1116_p9 = pneg %p1115_p12 }
  0x30   : > { %p1121_p1 = pnand %p1119_p5, %p1116_p9 }
  0x32   : > { %1124 = shalt.err (!%p1121_p1)
}
  0x33   : > { %s1429_s10 = smov [#allocation2]   ;;  %s2017_s20 = smov (%p52_p6, %s50_s20), 0 }
  0x34   : > { %1028 = dma.hbm_to_smem (!%p1026_p2), %s1989_s0, 16, %s1429_s10, [#allocation5]  }
  0x35   : > { %1990 = sst [smem:[#allocation28_spill]] %s2017_s20  ;;  %s1001_s12 = smul.u32 768, %s1423_s9 }
  0x36   : > { %s75_s13 = ssub.s32 %s1423_s9, %s2017_s20  ;;  %s1991_s22 = smul.u32 48, %s1554_s18 }
  0x37   : > { %p78_p9 = scmp.eq.s32.totalorder %s75_s13, 0  ;;  %s1992_s1 = sld [smem:[#allocation31_spill]] }
  0x38   : > { %s326_s23 = scalar_lea.vmem [#allocation6], %s1991_s22  ;;  %s1993_s10 = sadd.s32 1, %s1415_s29 }
  0x39   : > { %s335_s24 = sshll.u32 %s326_s23, 4  ;;  %s323_s0 = scalar_lea.sflag [#allocation3], %s1554_s18  ;;  %s1592_s24 = int_to_ptr.vmem [resolvable:$true] %s335_s24 }
  0x3a   : > { %s1597_s26 = scalar_select %p78_p9, %s1415_s29, %s1993_s10  }
  0x3b   : > { %p1127_p0 = pneg %p1558_p4 }
  0x3c   : > { %1994 = sst [smem:[#allocation29_spill]] %s1597_s26 }
  0x3d   : > { %s1590_s25 = scalar_lea.hbm %s1992_s1, %s1001_s12  ;;  %s1130_s23 = scalar_lea.hbm %s1992_s1, 1536 }
  0x3e   : > { %s1125_s20 = scalar_lea.hbm %s1590_s25, 768  ;;  %p1131_p10 = scmp.lt.u32.totalorder %s1590_s25, %s1992_s1 }
  0x3f   : > { %p1126_p12 = scmp.ne.s32.totalorder %s1590_s25, %s1125_s20  ;;  %p1132_p11 = scmp.lt.u32.totalorder %s1130_s23, %s1125_s20 }
  0x40   : > { %p1134_p1 = scmp.lt.u32.totalorder %s1125_s20, %s1590_s25 }
  0x41   : > { %p1128_p2 = pnand %p1127_p0, %p1126_p12  ;;  %p1133_p5 = por %p1132_p11, %p1131_p10 }
  0x43   : > { %p1129_p6 = pneg %p1128_p2  ;;  %p1135_p9 = por %p1134_p1, %p1133_p5 }
  0x45   : > { %p1136_p3 = pnand %p1135_p9, %p1129_p6 }
  0x47   : > { %1139 = shalt.err (!%p1136_p3)
}
  0x48   : > { %s1140_s10 = scalar_lea.vmem %s1592_s24, 768  ;;  %s1430_s13 = smov [#allocation6]  }
  0x49   : > { %p1141_p12 = scmp.ne.s32.totalorder %s1592_s24, %s1140_s10  ;;  %s1145_s22 = sshll.u32 %s1430_s13, 4  ;;  %s1146_s22 = int_to_ptr.vmem [resolvable:$false] %s1145_s22 }
  0x4a   : > { %s1147_s16 = scalar_lea.vmem %s1146_s22, 1536  ;;  %p1148_p7 = scmp.lt.s32.totalorder %s1592_s24, %s1146_s22 }
  0x4b   : > { %p1143_p2 = pnand %p1141_p12, %p1127_p0  ;;  %p1149_p10 = scmp.lt.s32.totalorder %s1147_s16, %s1140_s10 }
  0x4d   : > { %p1144_p8 = pneg %p1143_p2  ;;  %p1150_p11 = por %p1149_p10, %p1148_p7 }
  0x4f   : > { %p1151_p5 = pnand %p1150_p11, %p1144_p8 }
  0x51   : > { %1154 = shalt.err (!%p1151_p5)
}
  0x52   : > { %s1431_s20 = smov 128   ;;  %s1432_s23 = smov 8  }
  0x53   : > { %1032 = dma.hbm_to_vmem [thread:$0]  (!%p1558_p4), %s1590_s25, 768, %s1592_s24, %s323_s0, %s1431_s20, %s1431_s20, %s1432_s23  }
  0x54   : > { %s1995_s2 = sld [smem:[#allocation32_spill]]  ;;  %s1996_s22 = smul.u32 48, %s1554_s18 }
  0x55   : > { %s346_s26 = scalar_lea.sflag [#allocation8], %s1554_s18 }
  0x56   : > { %s349_s16 = scalar_lea.vmem [#allocation7], %s1996_s22 }
  0x57   : > { %s358_s1 = sshll.u32 %s349_s16, 4  ;;  %s1639_s1 = int_to_ptr.vmem [resolvable:$true] %s358_s1 }
  0x5a   : > { %s1635_s13 = scalar_lea.hbm %s1995_s2, %s1001_s12  ;;  %s1160_s12 = scalar_lea.hbm %s1995_s2, 1536 }
  0x5b   : > { %s1155_s29 = scalar_lea.hbm %s1635_s13, 768  ;;  %p1161_p6 = scmp.lt.u32.totalorder %s1635_s13, %s1995_s2 }
  0x5c   : > { %p1156_p3 = scmp.ne.s32.totalorder %s1635_s13, %s1155_s29  ;;  %p1162_p1 = scmp.lt.u32.totalorder %s1160_s12, %s1155_s29 }
  0x5d   : > { %p1164_p12 = scmp.lt.u32.totalorder %s1155_s29, %s1635_s13 }
  0x5e   : > { %p1158_p7 = pnand %p1156_p3, %p1127_p0  ;;  %p1163_p9 = por %p1162_p1, %p1161_p6 }
  0x60   : > { %p1159_p8 = pneg %p1158_p7  ;;  %p1165_p2 = por %p1164_p12, %p1163_p9 }
  0x62   : > { %p1166_p10 = pnand %p1165_p2, %p1159_p8 }
  0x64   : > { %1169 = shalt.err (!%p1166_p10)
}
  0x65   : > { %s1170_s10 = scalar_lea.vmem %s1639_s1, 768  ;;  %s1433_s22 = smov [#allocation7]  }
  0x66   : > { %p1171_p11 = scmp.ne.s32.totalorder %s1639_s1, %s1170_s10  ;;  %s1175_s16 = sshll.u32 %s1433_s22, 4  ;;  %s1176_s16 = int_to_ptr.vmem [resolvable:$false] %s1175_s16 }
  0x67   : > { %s1177_s0 = scalar_lea.vmem %s1176_s16, 1536  ;;  %p1178_p7 = scmp.lt.s32.totalorder %s1639_s1, %s1176_s16 }
  0x68   : > { %p1173_p5 = pnand %p1171_p11, %p1127_p0  ;;  %p1179_p6 = scmp.lt.s32.totalorder %s1177_s0, %s1170_s10 }
  0x6a   : > { %p1174_p3 = pneg %p1173_p5  ;;  %p1180_p1 = por %p1179_p6, %p1178_p7 }
  0x6c   : > { %p1181_p9 = pnand %p1180_p1, %p1174_p3 }
  0x6e   : > { %1184 = shalt.err (!%p1181_p9)
}
  0x6f   : > { %1035 = dma.hbm_to_vmem [thread:$0]  (!%p1558_p4), %s1635_s13, 768, %s1639_s1, %s346_s26, %s1431_s20, %s1431_s20, %s1432_s23  }
  0x70   : > { %370 = sbr.rel (%p1548_p13) target bundleno = 286 (0x11e), region = 32  ;;  %p1997_p0 = scmp.eq.s32.totalorder (!%p1548_p13), %s1518_s11, 0 }
  0x77   : > { %1378 = dma.done.wait (%p1997_p0), [#allocation5], 16   ;;  %p1998_p8 = pmov %p1997_p0 }
  0x78   : > { %s1677_s29 = sand.u32 1, %s1411_s28   ;;  %p1999_p12 = scmp.ne.s32.totalorder %s1983_s14, 0 }
  0x79   : > { %1380 = vsyncadd (%p1998_p8), [#allocation5], 4294967280  ;;  %s1004_s19 = smul.u32 48, %s1677_s29  ;;  %s377_s18 = scalar_lea.sflag [#allocation3], %s1677_s29 }
  0x7b   : > { %s380_s24 = scalar_lea.vmem [#allocation6], %s1004_s19 }
  0x7c   : > { %1382 = dma.done.wait (%p1999_p12), %s377_s18, 768  }
  0x7d   : > { %1384 = vsyncadd (%p1999_p12), %s377_s18, 4294966528  ;;  %s386_s1 = scalar_lea.sflag [#allocation8], %s1677_s29  ;;  %s389_s17 = scalar_lea.vmem [#allocation7], %s1004_s19 }
  0x7e   : > { %1386 = dma.done.wait (%p1999_p12), %s386_s1, 768  }
  0x7f   : > { %1388 = vsyncadd (%p1999_p12), %s386_s1, 4294966528 }
  0x80   : > { %394 = sfence }
  0x81   : > { %s1690_s26 = sld [smem:[#allocation2 + $0x3]]  ;;  %v454_v0 = vld [vmem:[%s380_s24] sm:$0xff]  ;;  %v455_v1 = vld [vmem:[%s380_s24 + $0x8] sm:$0xff]  ;;  %s456_s20 = sld [smem:[#allocation2]]  ;;  %v966_v2 = vld [vmem:[%s380_s24 + $0x10] sm:$0xff]  ;;  %vm525_vm0 = vcmask 130048  }
  0x82   : > { %v967_v3 = vld [vmem:[%s380_s24 + $0x18] sm:$0xff]  ;;  %s968_s23 = sld [smem:[#allocation2 + $0x1]]  ;;  %v971_v4 = vld [vmem:[%s380_s24 + $0x20] sm:$0xff]  ;;  %v972_v5 = vld [vmem:[%s380_s24 + $0x28] sm:$0xff]  ;;  %s973_s13 = sld [smem:[#allocation2 + $0x2]]  ;;  %v964_v8 = vclamps-f32 %v454_v0, 1.0 }
  0x83   : > { %v493_v6 = vld [vmem:[%s389_s17] sm:$0xff]  ;;  %v978_v7 = vld [vmem:[%s389_s17 + $0x10] sm:$0xff]  ;;  %v965_v9 = vclamps-f32 %v455_v1, 1.0  ;;  %v494_v12 = vld [vmem:[%s389_s17 + $0x8] sm:$0xff]  ;;  %s961_s14 = sshll.u32 %s1677_s29, 4  ;;  %v969_v13 = vclamps-f32 %v966_v2, 1.0 }
  0x84   : > { %v976_v10 = vclamps-f32 %v493_v6, 1.0  ;;  %v982_v11 = vld [vmem:[%s389_s17 + $0x20] sm:$0xff]  ;;  %v970_v14 = vclamps-f32 %v967_v3, 1.0  ;;  %v980_v15 = vclamps-f32 %v978_v7, 1.0  ;;  %v979_v16 = vld [vmem:[%s389_s17 + $0x18] sm:$0xff]  ;;  %v983_v17 = vld [vmem:[%s389_s17 + $0x28] sm:$0xff] }
  0x85   : > { %v974_v18 = vclamps-f32 %v971_v4, 1.0  ;;  %v975_v19 = vclamps-f32 %v972_v5, 1.0  ;;  %v984_v20 = vclamps-f32 %v982_v11, 1.0  ;;  %v977_v21 = vclamps-f32 %v494_v12, 1.0  ;;  %s1695_s12 = scalar_lea.vmem [#allocation10], %s961_s14  ;;  %s417_s21 = scalar_lea.vmem [#allocation9], %s961_s14 }
  0x86   : > { %v981_v23 = vclamps-f32 %v979_v16, 1.0  ;;  %v985_v24 = vclamps-f32 %v983_v17, 1.0  ;;  %s626_s25 = sshll.u32 %s1695_s12, 4  ;;  %s608_s10 = sshll.u32 %s417_s21, 4  ;;  %s1702_s25 = int_to_ptr.vmem [resolvable:$true] %s626_s25  ;;  %s1705_s10 = int_to_ptr.vmem [resolvable:$true] %s608_s10 }
  0x87   : > { %v461_v22 = vstv %s456_s20  ;;  %v490_v41 = vstv %s1690_s26  ;;  %s1975_s22 = sand.u32 1, %s1518_s11   ;;  %s998_s16 = sshll.u32 %s1419_s30, 8 }
  0x88   : > { %v462_v25 = vmul.f32 %v964_v8, %v461_v22  ;;  %v463_v26 = vmul.f32 %v965_v9, %v461_v22  ;;  %v472_v27 = vstv %s968_s23  ;;  %v499_v28 = vmul.f32 %v976_v10, %v461_v22  ;;  %s1717_s18 = scalar_lea.hbm %s1961_s4, %s998_s16  ;;  %s2000_s3 = sld [smem:[#allocation33_spill]] }
  0x89   : > { %v473_v29 = vmul.f32 %v969_v13, %v472_v27  ;;  %v474_v30 = vmul.f32 %v970_v14, %v472_v27  ;;  %v485_v31 = vstv %s973_s13  ;;  %v508_v32 = vmul.f32 %v980_v15, %v472_v27  ;;  %s572_s26 = scalar_lea.sflag [#allocation4], %s1677_s29  ;;  %s1185_s20 = scalar_lea.vmem %s1705_s10, 256 }
  0x8a   : > { %v486_v33 = vmul.f32 %v974_v18, %v485_v31  ;;  %v487_v34 = vmul.f32 %v975_v19, %v485_v31  ;;  %v519_v35 = vmul.f32 %v984_v20, %v485_v31  ;;  %v500_v36 = vmul.f32 %v977_v21, %v461_v22  ;;  %p1186_p13 = scmp.ne.s32.totalorder %s1705_s10, %s1185_s20  ;;  %p2001_p4 = scmp.ne.s32.totalorder %s1984_s15, 0 }
  0x8b   : > { %v475_v37 = vadd.f32 %v473_v29, %v462_v25  ;;  %v476_v38 = vadd.f32 %v474_v30, %v463_v26  ;;  %v510_v39 = vadd.f32 %v508_v32, %v499_v28  ;;  %v509_v40 = vmul.f32 %v981_v23, %v472_v27  ;;  %s1434_s23 = smov [#allocation9]  }
  0x8c   : > { %v520_v42 = vmul.f32 %v985_v24, %v485_v31  ;;  %p1187_p2 = pnand %p1186_p13, %p2001_p4  ;;  %s1189_s13 = sshll.u32 %s1434_s23, 4  ;;  %s1190_s13 = int_to_ptr.vmem [resolvable:$false] %s1189_s13 }
  0x8d   : > { %v488_v43 = vadd.f32 %v486_v33, %v475_v37  ;;  %v489_v44 = vadd.f32 %v487_v34, %v476_v38  ;;  %v521_v45 = vadd.f32 %v519_v35, %v510_v39  ;;  %v511_v46 = vadd.f32 %v509_v40, %v500_v36  ;;  %s1191_s14 = scalar_lea.vmem %s1190_s13, 512  ;;  %p1192_p11 = scmp.lt.s32.totalorder %s1705_s10, %s1190_s13 }
  0x8e   : > { %s1725_s17 = scalar_lea.hbm %s2000_s3, %s998_s16  ;;  %p1188_p10 = pneg %p1187_p2 }
  0x8f   : > { %v491_v47 = vadd.f32 %v490_v41, %v488_v43  ;;  %v492_v48 = vadd.f32 %v490_v41, %v489_v44  ;;  %v523_v49 = vadd.f32 %v521_v45, %v490_v41  ;;  %v522_v50 = vadd.f32 %v520_v42, %v511_v46  ;;  %p1193_p5 = scmp.lt.s32.totalorder %s1191_s14, %s1185_s20 }
  0x91   : > { %528 = vst.msk [vmem:[%s1695_s12] sm:$0xff] %vm525_vm0, %v523_v49  ;;  %v551_v51 = vsel %vm525_vm0, %v523_v49, inf  ;;  %v561_v52 = vsel %vm525_vm0, %v523_v49, -inf  ;;  %v524_v53 = vadd.f32 %v522_v50, %v490_v41  ;;  %v541_v54 = vsel %vm525_vm0, %v491_v47, -inf  ;;  %526 = vst.msk [vmem:[%s417_s21] sm:$0xff] %vm525_vm0, %v491_v47  ;;  %p1194_p3 = por %p1193_p5, %p1192_p11 }
  0x92   : > { %527 = vst.msk [vmem:[%s417_s21 + $0x8] sm:$0xff] %vm525_vm0, %v492_v48  ;;  %v542_v55 = vsel %vm525_vm0, %v492_v48, -inf  ;;  %v530_v56 = vsel %vm525_vm0, %v491_v47, inf  ;;  %v531_v57 = vsel %vm525_vm0, %v492_v48, inf }
  0x93   : > { %529 = vst.msk [vmem:[%s1695_s12 + $0x8] sm:$0xff] %vm525_vm0, %v524_v53  ;;  %v552_v58 = vsel %vm525_vm0, %v524_v53, inf  ;;  %v562_v59 = vsel %vm525_vm0, %v524_v53, -inf  ;;  %v1731_v60 = vmax.f32 %v541_v54, %v542_v55  ;;  %v1733_v61 = vmin.f32 %v530_v56, %v531_v57  ;;  %p1195_p7 = pnand %p1194_p3, %p1188_p10 }
  0x95   : > { %1198 = shalt.err (!%p1195_p7)
}
  0x96   : > { %s1199_s12 = scalar_lea.hbm %s1725_s17, 256  ;;  %s1203_s0 = scalar_lea.hbm %s2000_s3, 512 }
  0x97   : > { %p1200_p6 = scmp.ne.s32.totalorder %s1725_s17, %s1199_s12  ;;  %p1204_p0 = scmp.lt.u32.totalorder %s1725_s17, %s2000_s3 }
  0x98   : > { %p1205_p8 = scmp.lt.u32.totalorder %s1203_s0, %s1199_s12  ;;  %p1207_p13 = scmp.lt.u32.totalorder %s1199_s12, %s1725_s17 }
  0x99   : > { %p1201_p1 = pnand %p1200_p6, %p2001_p4 }
  0x9a   : > { %p1206_p12 = por %p1205_p8, %p1204_p0 }
  0x9b   : > { %p1202_p9 = pneg %p1201_p1 }
  0x9c   : > { %p1208_p2 = por %p1207_p13, %p1206_p12 }
  0x9e   : > { %p1209_p10 = pnand %p1208_p2, %p1202_p9 }
  0xa0   : > { %1212 = shalt.err (!%p1209_p10)
}
  0xa1   : > { %s1435_s1 = smov 128   ;;  %s1436_s20 = smov 8   ;;  %v553_v62 = vmin.f32 %v551_v51, %v552_v58  ;;  %v563_v63 = vmax.f32 %v561_v52, %v562_v59 }
  0xa2   : > { %1013 = dma.vmem_to_hbm [thread:$0]  (%p2001_p4), %s1705_s10, 256, %s1725_s17, %s572_s26, %s1435_s1, %s1435_s1, %s1436_s20  }
  0xa3   : > { %s1764_s23 = scalar_lea.sflag [#allocation11], %s1975_s22  ;;  %s1213_s13 = scalar_lea.vmem %s1702_s25, 256 }
  0xa4   : > { %p1214_p11 = scmp.ne.s32.totalorder %s1702_s25, %s1213_s13  ;;  %s1437_s14 = smov [#allocation10]  }
  0xa5   : > { %s1217_s12 = sshll.u32 %s1437_s14, 4  ;;  %s1218_s12 = int_to_ptr.vmem [resolvable:$false] %s1217_s12 }
  0xa6   : > { %p1215_p5 = pnand %p1214_p11, %p2001_p4  ;;  %s1219_s21 = scalar_lea.vmem %s1218_s12, 512 }
  0xa7   : > { %p1220_p7 = scmp.lt.s32.totalorder %s1702_s25, %s1218_s12  ;;  %p1221_p6 = scmp.lt.s32.totalorder %s1219_s21, %s1213_s13 }
  0xa8   : > { %p1216_p3 = pneg %p1215_p5 }
  0xa9   : > { %p1222_p1 = por %p1221_p6, %p1220_p7 }
  0xab   : > { %p1223_p9 = pnand %p1222_p1, %p1216_p3 }
  0xad   : > { %1226 = shalt.err (!%p1223_p9)
}
  0xae   : > { %s1227_s10 = scalar_lea.hbm %s1717_s18, 256  ;;  %s1231_s16 = scalar_lea.hbm %s1961_s4, 512 }
  0xaf   : > { %p1228_p0 = scmp.ne.s32.totalorder %s1717_s18, %s1227_s10  ;;  %p1232_p13 = scmp.lt.u32.totalorder %s1717_s18, %s1961_s4 }
  0xb0   : > { %p1233_p2 = scmp.lt.u32.totalorder %s1231_s16, %s1227_s10  ;;  %p1235_p11 = scmp.lt.u32.totalorder %s1227_s10, %s1717_s18 }
  0xb1   : > { %p1229_p8 = pnand %p1228_p0, %p2001_p4 }
  0xb2   : > { %p1234_p10 = por %p1233_p2, %p1232_p13 }
  0xb3   : > { %p1230_p12 = pneg %p1229_p8 }
  0xb4   : > { %p1236_p5 = por %p1235_p11, %p1234_p10 }
  0xb6   : > { %p1237_p3 = pnand %p1236_p5, %p1230_p12 }
  0xb8   : > { %1240 = shalt.err (!%p1237_p3)
}
  0xb9   : > { %1014 = dma.vmem_to_hbm [thread:$0]  (%p2001_p4), %s1702_s25, 256, %s1717_s18, %s1764_s23, %s1435_s1, %s1435_s1, %s1436_s20   ;;  %v544_v0 = vrot.slane %v1731_v60, 4  ;;  %v533_v1 = vrot.slane %v1733_v61, 4  ;;  %v554_v2 = vrot.slane %v553_v62, 4  ;;  %v564_v3 = vrot.slane %v563_v63, 4 }
  0xba   : > { %s436_s24 = scalar_lea.vmem [#allocation13], %s1677_s29  ;;  %s1976_s18 = scalar_lea.vmem [#allocation12], %s1677_s29  ;;  %vm539_vm1 = vcmask 122880  }
  0xbb   : > { %v545_v4 = vmax.f32 %v1731_v60, %v544_v0  ;;  %v534_v5 = vmin.f32 %v1733_v61, %v533_v1  ;;  %v555_v6 = vmin.f32 %v553_v62, %v554_v2  ;;  %v565_v7 = vmax.f32 %v563_v63, %v564_v3  ;;  %s657_s25 = sshll.u32 %s436_s24, 4  ;;  %s643_s1 = sshll.u32 %s1976_s18, 4  ;;  %s1804_s25 = int_to_ptr.vmem [resolvable:$true] %s657_s25  ;;  %s1806_s1 = int_to_ptr.vmem [resolvable:$true] %s643_s1 }
  0xbc   : > { %s442_s20 = scalar_lea.vmem [#allocation15], %s1677_s29  ;;  %s448_s14 = scalar_lea.vmem [#allocation16], %s1677_s29 }
  0xbd   : > { %v546_v8 = vrot.slane %v545_v4, 2  ;;  %v535_v9 = vrot.slane %v534_v5, 2  ;;  %v556_v10 = vrot.slane %v555_v6, 2  ;;  %v566_v11 = vrot.slane %v565_v7, 2  ;;  %s671_s13 = sshll.u32 %s442_s20, 4  ;;  %s685_s12 = sshll.u32 %s448_s14, 4  ;;  %s1808_s13 = int_to_ptr.vmem [resolvable:$true] %s671_s13  ;;  %s1810_s12 = int_to_ptr.vmem [resolvable:$true] %s685_s12 }
  0xbe   : > { %s992_s21 = sshll.u32 %s1419_s30, 4  ;;  %s2002_s30 = scalar_lea.vmem [#allocation12], %s1677_s29 }
  0xbf   : > { %v547_v12 = vmax.f32 %v545_v4, %v546_v8  ;;  %v536_v13 = vmin.f32 %v534_v5, %v535_v9  ;;  %v557_v14 = vmin.f32 %v555_v6, %v556_v10  ;;  %v567_v15 = vmax.f32 %v565_v7, %v566_v11  ;;  %s1815_s17 = scalar_lea.hbm %s1963_s6, %s992_s21  ;;  %s1820_s0 = scalar_lea.hbm %s1962_s5, %s992_s21 }
  0xc0   : > { %s1825_s18 = scalar_lea.hbm %s1964_s7, %s992_s21  ;;  %s1836_s3 = scalar_lea.hbm %s1965_s8, %s992_s21 }
  0xc1   : > { %v548_v16 = vrot.slane %v547_v12, 1  ;;  %v537_v17 = vrot.slane %v536_v13, 1  ;;  %v558_v18 = vrot.slane %v557_v14, 1  ;;  %v568_v19 = vrot.slane %v567_v15, 1  ;;  %s2003_s26 = sand.u32 1, %s1518_s11   ;;  %s1241_s16 = scalar_lea.vmem %s1804_s25, 16 }
  0xc2   : > { %s1842_s22 = scalar_lea.sflag [#allocation14], %s2003_s26  ;;  %p1242_p7 = scmp.ne.s32.totalorder %s1804_s25, %s1241_s16 }
  0xc3   : > { %v549_v20 = vmax.f32 %v547_v12, %v548_v16  ;;  %v538_v21 = vmin.f32 %v536_v13, %v537_v17  ;;  %v559_v22 = vmin.f32 %v557_v14, %v558_v18  ;;  %v569_v23 = vmax.f32 %v567_v15, %v568_v19 }
  0xc4   : > { %p1243_p6 = pnand %p1242_p7, %p2001_p4 }
  0xc5   : > { %550 = vst.msk [vmem:[%s436_s24] sm:$0x1] %vm539_vm1, %v549_v20  ;;  %540 = vst.msk [vmem:[%s2002_s30] sm:$0x1] %vm539_vm1, %v538_v21  ;;  %s1438_s24 = smov [#allocation13]  }
  0xc6   : > { %560 = vst.msk [vmem:[%s442_s20] sm:$0x1] %vm539_vm1, %v559_v22  ;;  %570 = vst.msk [vmem:[%s448_s14] sm:$0x1] %vm539_vm1, %v569_v23  ;;  %p1244_p1 = pneg %p1243_p6  ;;  %s1245_s19 = sshll.u32 %s1438_s24, 4  ;;  %s1246_s19 = int_to_ptr.vmem [resolvable:$false] %s1245_s19 }
  0xc7   : > { %s1247_s30 = scalar_lea.vmem %s1246_s19, 32  ;;  %p1248_p9 = scmp.lt.s32.totalorder %s1804_s25, %s1246_s19 }
  0xc8   : > { %p1249_p0 = scmp.lt.s32.totalorder %s1247_s30, %s1241_s16 }
  0xca   : > { %p1250_p8 = por %p1249_p0, %p1248_p9 }
  0xcc   : > { %p1251_p12 = pnand %p1250_p8, %p1244_p1 }
  0xce   : > { %1254 = shalt.err (!%p1251_p12)
}
  0xcf   : > { %s1255_s2 = scalar_lea.hbm %s1815_s17, 16  ;;  %s1259_s14 = scalar_lea.hbm %s1963_s6, 32 }
  0xd0   : > { %p1256_p13 = scmp.ne.s32.totalorder %s1815_s17, %s1255_s2  ;;  %p1260_p11 = scmp.lt.u32.totalorder %s1815_s17, %s1963_s6 }
  0xd1   : > { %p1261_p5 = scmp.lt.u32.totalorder %s1259_s14, %s1255_s2  ;;  %p1263_p7 = scmp.lt.u32.totalorder %s1255_s2, %s1815_s17 }
  0xd2   : > { %p1257_p2 = pnand %p1256_p13, %p2001_p4 }
  0xd3   : > { %p1262_p3 = por %p1261_p5, %p1260_p11 }
  0xd4   : > { %p1258_p10 = pneg %p1257_p2 }
  0xd5   : > { %p1264_p6 = por %p1263_p7, %p1262_p3 }
  0xd7   : > { %p1265_p1 = pnand %p1264_p6, %p1258_p10 }
  0xd9   : > { %1268 = shalt.err (!%p1265_p1)
}
  0xda   : > { %1016 = dma.vmem_to_hbm [thread:$0]  (%p2001_p4), %s1804_s25, 16, %s1815_s17, %s1842_s22  }
  0xdb   : > { %s1269_s26 = scalar_lea.vmem %s1806_s1, 16  ;;  %s1439_s16 = smov [#allocation12]  }
  0xdc   : > { %p1270_p9 = scmp.ne.s32.totalorder %s1806_s1, %s1269_s26  ;;  %s1273_s24 = sshll.u32 %s1439_s16, 4  ;;  %s1274_s24 = int_to_ptr.vmem [resolvable:$false] %s1273_s24 }
  0xdd   : > { %s1275_s19 = scalar_lea.vmem %s1274_s24, 32  ;;  %p1276_p12 = scmp.lt.s32.totalorder %s1806_s1, %s1274_s24 }
  0xde   : > { %p1271_p0 = pnand %p1270_p9, %p2001_p4  ;;  %p1277_p13 = scmp.lt.s32.totalorder %s1275_s19, %s1269_s26 }
  0xe0   : > { %p1272_p8 = pneg %p1271_p0  ;;  %p1278_p2 = por %p1277_p13, %p1276_p12 }
  0xe2   : > { %p1279_p10 = pnand %p1278_p2, %p1272_p8 }
  0xe4   : > { %1282 = shalt.err (!%p1279_p10)
}
  0xe5   : > { %s1283_s25 = scalar_lea.hbm %s1820_s0, 16  ;;  %s1287_s2 = scalar_lea.hbm %s1962_s5, 32 }
  0xe6   : > { %p1284_p11 = scmp.ne.s32.totalorder %s1820_s0, %s1283_s25  ;;  %p1288_p7 = scmp.lt.u32.totalorder %s1820_s0, %s1962_s5 }
  0xe7   : > { %p1289_p6 = scmp.lt.u32.totalorder %s1287_s2, %s1283_s25  ;;  %p1291_p9 = scmp.lt.u32.totalorder %s1283_s25, %s1820_s0 }
  0xe8   : > { %p1285_p5 = pnand %p1284_p11, %p2001_p4 }
  0xe9   : > { %p1290_p1 = por %p1289_p6, %p1288_p7 }
  0xea   : > { %p1286_p3 = pneg %p1285_p5 }
  0xeb   : > { %p1292_p0 = por %p1291_p9, %p1290_p1 }
  0xed   : > { %p1293_p8 = pnand %p1292_p0, %p1286_p3 }
  0xef   : > { %1296 = shalt.err (!%p1293_p8)
}
  0xf0   : > { %1015 = dma.vmem_to_hbm [thread:$0]  (%p2001_p4), %s1806_s1, 16, %s1820_s0, %s1764_s23  }
  0xf1   : > { %s1297_s14 = scalar_lea.vmem %s1808_s13, 16  ;;  %s1440_s21 = smov [#allocation15]  }
  0xf2   : > { %p1298_p12 = scmp.ne.s32.totalorder %s1808_s13, %s1297_s14  ;;  %s1301_s10 = sshll.u32 %s1440_s21, 4  ;;  %s1302_s10 = int_to_ptr.vmem [resolvable:$false] %s1301_s10 }
  0xf3   : > { %s1303_s26 = scalar_lea.vmem %s1302_s10, 32  ;;  %p1304_p10 = scmp.lt.s32.totalorder %s1808_s13, %s1302_s10 }
  0xf4   : > { %p1299_p13 = pnand %p1298_p12, %p2001_p4  ;;  %p1305_p11 = scmp.lt.s32.totalorder %s1303_s26, %s1297_s14 }
  0xf6   : > { %p1300_p2 = pneg %p1299_p13  ;;  %p1306_p5 = por %p1305_p11, %p1304_p10 }
  0xf8   : > { %p1307_p3 = pnand %p1306_p5, %p1300_p2 }
  0xfa   : > { %1310 = shalt.err (!%p1307_p3)
}
  0xfb   : > { %s1311_s23 = scalar_lea.hbm %s1825_s18, 16  ;;  %s1315_s16 = scalar_lea.hbm %s1964_s7, 32 }
  0xfc   : > { %p1312_p7 = scmp.ne.s32.totalorder %s1825_s18, %s1311_s23  ;;  %p1316_p9 = scmp.lt.u32.totalorder %s1825_s18, %s1964_s7 }
  0xfd   : > { %p1317_p0 = scmp.lt.u32.totalorder %s1315_s16, %s1311_s23  ;;  %p1319_p12 = scmp.lt.u32.totalorder %s1311_s23, %s1825_s18 }
  0xfe   : > { %p1313_p6 = pnand %p1312_p7, %p2001_p4 }
  0xff   : > { %p1318_p8 = por %p1317_p0, %p1316_p9 }
 0x100   : > { %p1314_p1 = pneg %p1313_p6 }
 0x101   : > { %p1320_p13 = por %p1319_p12, %p1318_p8 }
 0x103   : > { %p1321_p2 = pnand %p1320_p13, %p1314_p1 }
 0x105   : > { %1324 = shalt.err (!%p1321_p2)
}
 0x106   : > { %1017 = dma.vmem_to_hbm [thread:$0]  (%p2001_p4), %s1808_s13, 16, %s1825_s18, %s1842_s22  }
 0x107   : > { %s594_s25 = scalar_lea.sflag [#allocation17], %s1677_s29  ;;  %s1325_s17 = scalar_lea.vmem %s1810_s12, 16 }
 0x108   : > { %p1326_p10 = scmp.ne.s32.totalorder %s1810_s12, %s1325_s17  ;;  %s1441_s30 = smov [#allocation16]  }
 0x109   : > { %s1329_s2 = sshll.u32 %s1441_s30, 4  ;;  %s1330_s2 = int_to_ptr.vmem [resolvable:$false] %s1329_s2 }
 0x10a   : > { %p1327_p11 = pnand %p1326_p10, %p2001_p4  ;;  %s1331_s11 = scalar_lea.vmem %s1330_s2, 32 }
 0x10b   : > { %p1332_p3 = scmp.lt.s32.totalorder %s1810_s12, %s1330_s2  ;;  %p1333_p7 = scmp.lt.s32.totalorder %s1331_s11, %s1325_s17 }
 0x10c   : > { %p1328_p5 = pneg %p1327_p11 }
 0x10d   : > { %p1334_p6 = por %p1333_p7, %p1332_p3 }
 0x10f   : > { %p1335_p1 = pnand %p1334_p6, %p1328_p5 }
 0x111   : > { %1338 = shalt.err (!%p1335_p1)
}
 0x112   : > { %s1339_s29 = scalar_lea.hbm %s1836_s3, 16  ;;  %s1343_s22 = scalar_lea.hbm %s1965_s8, 32 }
 0x113   : > { %p1340_p9 = scmp.ne.s32.totalorder %s1836_s3, %s1339_s29  ;;  %p1344_p12 = scmp.lt.u32.totalorder %s1836_s3, %s1965_s8 }
 0x114   : > { %p1345_p13 = scmp.lt.u32.totalorder %s1343_s22, %s1339_s29  ;;  %p1347_p10 = scmp.lt.u32.totalorder %s1339_s29, %s1836_s3 }
 0x115   : > { %p1341_p0 = pnand %p1340_p9, %p2001_p4 }
 0x116   : > { %p1346_p2 = por %p1345_p13, %p1344_p12 }
 0x117   : > { %p1342_p8 = pneg %p1341_p0 }
 0x118   : > { %p1348_p11 = por %p1347_p10, %p1346_p2 }
 0x11a   : > { %p1349_p5 = pnand %p1348_p11, %p1342_p8 }
 0x11c   : > { %1352 = shalt.err (!%p1349_p5)
}
 0x11d   : > { %1018 = dma.vmem_to_hbm [thread:$0]  (%p2001_p4), %s1810_s12, 16, %s1836_s3, %s594_s25  }
 0x11e PF: > { %s2004_s21 = sld [smem:[#allocation27_spill]]  ;;  %s2005_s10 = sld [smem:[#allocation26_spill]] }
 0x11f   : > { %s697_s26 = sand.u32 1, %s1407_s27  }
 0x120   : > { %s698_s23 = scalar_lea.sflag [#allocation4], %s697_s26 }
 0x124   : > { %p2006_p3 = scmp.ne.s32.totalorder %s2004_s21, 0  ;;  %p2007_p7 = scmp.ge.s32.totalorder %s2005_s10, 2 }
 0x126   : > { %p1037_p6 = pnand %p2007_p7, %p2006_p3 }
 0x128   : > { %1390 = dma.done.wait (!%p1037_p6), %s698_s23, 256  }
 0x129   : > { %1392 = vsyncadd (!%p1037_p6), %s698_s23, 4294967040  ;;  %s2008_s1 = sadd.s32 4294967294, %s2005_s10  }
 0x12a   : > { %s706_s0 = sand.u32 1, %s2008_s1  }
 0x12b   : > { %s707_s16 = scalar_lea.sflag [#allocation11], %s706_s0 }
 0x12c   : > { %1394 = dma.done.wait (!%p1037_p6), %s707_s16, 272  }
 0x12d   : > { %1396 = vsyncadd (!%p1037_p6), %s707_s16, 4294967024  ;;  %s724_s15 = scalar_lea.sflag [#allocation14], %s706_s0 }
 0x12e   : > { %1398 = dma.done.wait (!%p1037_p6), %s724_s15, 32  }
 0x12f   : > { %1400 = vsyncadd (!%p1037_p6), %s724_s15, 4294967264  ;;  %s740_s3 = scalar_lea.sflag [#allocation17], %s697_s26 }
 0x130   : > { %1402 = dma.done.wait (!%p1037_p6), %s740_s3, 16  }
 0x131   : > { %1404 = vsyncadd (!%p1037_p6), %s740_s3, 4294967280  ;;  %s38_s10 = sadd.s32 1, %s2005_s10   ;;  %s2009_s12 = sld [smem:[#allocation25_spill]] }
 0x132   : > { %p35_p4 = scmp.ge.s32.totalorder %s38_s10, 4   ;;  %s2010_s29 = sld [smem:[#allocation29_spill]] }
 0x133   : > { %s2011_s24 = sld [smem:[#allocation28_spill]]  ;;  %s2012_s27 = smov %s1411_s28 }
 0x134   : > { %s2014_s30 = smov %s1423_s9  ;;  %37 = sbr.rel (!%p35_p4) target bundleno = 20 (0x14), region = 180 }
 0x137   : > { %s2013_s28 = smov %s2009_s12 }
 0x139   : > { %s2015_s9 = smov %s2011_s24 }
 0x13b   :  { %744 = vsyncpa [#allocation3], 1 }
 0x13c   :  { %746 = vsyncpa [#allocation3 + $0x1], 1 }
 0x13d   :  { %747 = vsyncpa [#allocation8], 1 }
 0x13e   :  { %749 = vsyncpa [#allocation8 + $0x1], 1 }
 0x13f   :  { %750 = vsyncpa [#allocation4], 1 }
 0x140   :  { %752 = vsyncpa [#allocation4 + $0x1], 1 }
 0x141   :  { %753 = vsyncpa [#allocation11], 1 }
 0x142   :  { %755 = vsyncpa [#allocation11 + $0x1], 1 }
 0x143   :  { %756 = vsyncpa [#allocation14], 1 }
 0x144   :  { %758 = vsyncpa [#allocation14 + $0x1], 1 }
 0x145   :  { %759 = vsyncpa [#allocation17], 1 }
 0x146   :  { %761 = vsyncpa [#allocation17 + $0x1], 1 }
 0x147   :  { %762 = vsyncpa [#allocation5], 1 }
 0x148   :  { %764 = vsyncpa [#allocation5 + $0x1], 1 }

</bundles_post_ra>
